<compile_context>
chip_gen: v6e
topology: v6e:2x2x1
jax: 0.10.0
libtpu: 0.0.40
codegen_flags: <defaults>
</compile_context>

<pallas_src>
import jax
import jax.numpy as jnp
from jax.experimental import pallas as pl
from jax.experimental.pallas import tpu as pltpu


# --------------------------------------------------------------------------
# Kernels
# --------------------------------------------------------------------------
def _se_kernel_hw_lanes(x_ref, w1t_ref, b1_ref, w2t_ref, b2_ref, o_ref):
    """Block layout (Nb, C, HW): spatial dim on lanes (NCHW path)."""
    x = x_ref[...].astype(jnp.float32)                # (Nb, C, HW)
    hw = x.shape[-1]

    # Global average pool over spatial (lane reduction) -> lane-dense (Nb, C).
    mean = jnp.sum(x, axis=-1) * (1.0 / hw)           # (Nb, C)

    # fc1: 1x1 conv C -> S  == (Nb, C) @ (C, S), bias, ReLU.
    h = jnp.dot(mean, w1t_ref[...].astype(jnp.float32),
                preferred_element_type=jnp.float32)
    h = jnp.maximum(h + b1_ref[...].astype(jnp.float32), 0.0)     # (Nb, S)

    # fc2: 1x1 conv S -> C  == (Nb, S) @ (S, C), bias, sigmoid.
    s = jnp.dot(h, w2t_ref[...].astype(jnp.float32),
                preferred_element_type=jnp.float32)
    s = jax.nn.sigmoid(s + b2_ref[...].astype(jnp.float32))       # (Nb, C)

    # Per-(batch, channel) scale broadcast along the lane (spatial) axis.
    o_ref[...] = (x * s[:, :, None]).astype(o_ref.dtype)


def _se_kernel_c_lanes(x_ref, w1t_ref, b1_ref, w2t_ref, b2_ref, o_ref):
    """Block layout (Nb, HW, C): channel dim on lanes (NHWC path)."""
    x = x_ref[...].astype(jnp.float32)                # (Nb, HW, C)
    hw = x.shape[1]

    # Global average pool over spatial (sublane reduction); C stays on lanes.
    mean = jnp.sum(x, axis=1) * (1.0 / hw)            # (Nb, C)

    h = jnp.dot(mean, w1t_ref[...].astype(jnp.float32),
                preferred_element_type=jnp.float32)
    h = jnp.maximum(h + b1_ref[...].astype(jnp.float32), 0.0)     # (Nb, S)

    s = jnp.dot(h, w2t_ref[...].astype(jnp.float32),
                preferred_element_type=jnp.float32)
    s = jax.nn.sigmoid(s + b2_ref[...].astype(jnp.float32))       # (Nb, C)

    # Scale broadcast along sublanes (spatial axis); stores stay lane-dense.
    o_ref[...] = (x * s[:, None, :]).astype(o_ref.dtype)


# --------------------------------------------------------------------------
# Block-size / VMEM budgeting
# --------------------------------------------------------------------------
def _vmem_capacity_bytes():
    try:
        return int(pltpu.get_tpu_info().vmem_capacity_bytes)
    except Exception:
        return 64 << 20          # conservative (v7x per-TensorCore)


def _block_target_bytes():
    """Per-block byte target: ~1/16 of physical VMEM (4 copies resident from
    double-buffered input + output slabs), clamped to [2 MiB, 6 MiB]."""
    vmem = _vmem_capacity_bytes()
    return int(max(2 << 20, min(6 << 20, vmem // 16)))


def _pick_batch_block(n, row_bytes, target_bytes):
    """Pick Nb so the block is ~target_bytes, while guaranteeing >=2 grid
    steps whenever N >= 2 (v7x dual-TC sharding of the 'parallel' axis) and
    >=4 steps when N allows (double-buffer pipelining)."""
    nb = max(1, min(n, target_bytes // max(row_bytes, 1)))
    if n >= 8:
        nb = min(nb, max(1, n // 4))
    elif n >= 2:
        nb = min(nb, max(1, (n + 1) // 2))
    return nb


# --------------------------------------------------------------------------
# pallas_call wrapper shared by both layouts
# --------------------------------------------------------------------------
def _se_pallas(kernel, x3, w1t, b1_row, w2t, b2_row):
    """x3: (N, D1, D2) where the last dim is the lane axis for this layout."""
    N, D1, D2 = x3.shape
    row_bytes = D1 * D2 * x3.dtype.itemsize
    nb = _pick_batch_block(N, row_bytes, _block_target_bytes())
    grid = (pl.cdiv(N, nb),)

    block_bytes = nb * row_bytes
    weight_bytes = sum(int(a.size) * a.dtype.itemsize
                       for a in (w1t, b1_row, w2t, b2_row))
    # 2x double-buffered input + 2x double-buffered output + weights + slack.
    vmem_limit = int(4 * block_bytes + 2 * weight_bytes + (4 << 20))

    return pl.pallas_call(
        kernel,
        out_shape=jax.ShapeDtypeStruct((N, D1, D2), x3.dtype),
        grid_spec=pltpu.PrefetchScalarGridSpec(
            num_scalar_prefetch=0,
            grid=grid,
            in_specs=[
                pl.BlockSpec((nb, D1, D2), lambda n: (n, 0, 0)),   # x slab
                pl.BlockSpec(w1t.shape, lambda n: (0, 0)),         # fc1 W^T
                pl.BlockSpec(b1_row.shape, lambda n: (0, 0)),      # fc1 bias
                pl.BlockSpec(w2t.shape, lambda n: (0, 0)),         # fc2 W^T
                pl.BlockSpec(b2_row.shape, lambda n: (0, 0)),      # fc2 bias
            ],
            out_specs=pl.BlockSpec((nb, D1, D2), lambda n: (n, 0, 0)),
        ),
        compiler_params=pltpu.CompilerParams(
            dimension_semantics=("parallel",),
            vmem_limit_bytes=vmem_limit),
    )(x3, w1t, b1_row, w2t, b2_row)


# --------------------------------------------------------------------------
# Public entry points
# --------------------------------------------------------------------------
def squeeze_excitation(x, w1, b1, w2, b2):
    """NCHW SqueezeExcitation. x: (N, C, H, W). Spatial dim goes on lanes.

    w1: (S, C) fc1 weight (Conv2d (S, C, 1, 1) squeezed), b1: (S,)
    w2: (C, S) fc2 weight (Conv2d (C, S, 1, 1) squeezed), b2: (C,)
    """
    N, C, H, W = x.shape
    S = w1.shape[0]
    x3 = x.reshape(N, C, H * W)
    out3 = _se_pallas(_se_kernel_hw_lanes, x3,
                      w1.T, b1.reshape(1, S), w2.T, b2.reshape(1, C))
    return out3.reshape(N, C, H, W)


def squeeze_excitation_nhwc(x, w1, b1, w2, b2):
    """NHWC SqueezeExcitation. x: (N, H, W, C). Channel dim goes on lanes —
    preferred for late MobileNetV3 SE blocks (C=480..960, HW=49..196)."""
    N, H, W, C = x.shape
    S = w1.shape[0]
    x3 = x.reshape(N, H * W, C)
    out3 = _se_pallas(_se_kernel_c_lanes, x3,
                      w1.T, b1.reshape(1, S), w2.T, b2.reshape(1, C))
    return out3.reshape(N, H, W, C)


# --------------------------------------------------------------------------
# Pure-JAX reference (NCHW)
# --------------------------------------------------------------------------
def _reference(x, w1, b1, w2, b2):
    xf = x.astype(jnp.float32)
    mean = jnp.mean(xf, axis=(2, 3))                               # (N, C)
    h = jnp.maximum(mean @ w1.T + b1, 0.0)                         # (N, S)
    s = jax.nn.sigmoid(h @ w2.T + b2)                              # (N, C)
    return (xf * s[:, :, None, None]).astype(x.dtype)


if __name__ == "__main__":
    key = jax.random.PRNGKey(0)
    kx, k1, k2, k3, k4, kx2 = jax.random.split(key, 6)

    # --- Test 1: NCHW path, SqueezeExcitation(16, 8) on (2, 16, 16, 16). ---
    N, C, S, H, W = 2, 16, 8, 16, 16
    x = jax.random.normal(kx, (N, C, H, W), dtype=jnp.float32)
    w1 = jax.random.normal(k1, (S, C), dtype=jnp.float32) * 0.1
    b1 = jax.random.normal(k2, (S,), dtype=jnp.float32) * 0.1
    w2 = jax.random.normal(k3, (C, S), dtype=jnp.float32) * 0.1
    b2 = jax.random.normal(k4, (C,), dtype=jnp.float32) * 0.1

    out = jax.block_until_ready(squeeze_excitation(x, w1, b1, w2, b2))
    ref = _reference(x, w1, b1, w2, b2)
    assert out.shape == x.shape and out.dtype == x.dtype
    assert jnp.allclose(out, ref, atol=1e-5, rtol=1e-5), "NCHW mismatch"

    # --- Test 2: NHWC path (C on lanes), N=3 exercises the ragged tail. ---
    N2, C2, S2, H2, W2 = 3, 32, 8, 4, 4
    x2 = jax.random.normal(kx2, (N2, C2, H2, W2), dtype=jnp.float32)
    w1b = jax.random.normal(k1, (S2, C2), dtype=jnp.float32) * 0.1
    b1b = jax.random.normal(k2, (S2,), dtype=jnp.float32) * 0.1
    w2b = jax.random.normal(k3, (C2, S2), dtype=jnp.float32) * 0.1
    b2b = jax.random.normal(k4, (C2,), dtype=jnp.float32) * 0.1

    x2_nhwc = jnp.transpose(x2, (0, 2, 3, 1))
    out2 = jax.block_until_ready(
        squeeze_excitation_nhwc(x2_nhwc, w1b, b1b, w2b, b2b))
    ref2 = jnp.transpose(_reference(x2, w1b, b1b, w2b, b2b), (0, 2, 3, 1))
    assert out2.shape == x2_nhwc.shape
    assert jnp.allclose(out2, ref2, atol=1e-5, rtol=1e-5), "NHWC mismatch"

    # --- Test 3: bf16 in/out with f32 accumulation (dtype-generic path). ---
    x_bf16 = x.astype(jnp.bfloat16)
    out3 = jax.block_until_ready(squeeze_excitation(x_bf16, w1, b1, w2, b2))
    ref3 = _reference(x_bf16, w1, b1, w2, b2)
    assert out3.dtype == jnp.bfloat16
    assert jnp.allclose(out3.astype(jnp.float32), ref3.astype(jnp.float32),
                        atol=2e-2, rtol=2e-2), "bf16 mismatch"

    print("KERNEL_OK")
</pallas_src>

<mosaic_0001>
module attributes {stable_mosaic.version = 11 : i64} {
  func.func @_se_kernel_hw_lanes(%arg0: i32, %arg1: memref<1x16x256xf32, #tpu.memory_space<vmem>>, %arg2: memref<16x8xf32, #tpu.memory_space<vmem>>, %arg3: memref<1x8xf32, #tpu.memory_space<vmem>>, %arg4: memref<8x16xf32, #tpu.memory_space<vmem>>, %arg5: memref<1x16xf32, #tpu.memory_space<vmem>>, %arg6: memref<1x16x256xf32, #tpu.memory_space<vmem>>) attributes {dimension_semantics = [#tpu.dimension_semantics<parallel>], iteration_bounds = array<i64: 2>, scalar_prefetch = 0 : i64, scratch_operands = 0 : i64, tpu.core_type = #tpu.core_type<tc>, window_params = [{transform_indices = @transform_0, window_bounds = array<i64: 1, 16, 256>}, {pipeline_mode = #tpu.pipeline_mode<synchronous>, transform_indices = @transform_1, window_bounds = array<i64: 16, 8>}, {pipeline_mode = #tpu.pipeline_mode<synchronous>, transform_indices = @transform_2, window_bounds = array<i64: 1, 8>}, {pipeline_mode = #tpu.pipeline_mode<synchronous>, transform_indices = @transform_3, window_bounds = array<i64: 8, 16>}, {pipeline_mode = #tpu.pipeline_mode<synchronous>, transform_indices = @transform_4, window_bounds = array<i64: 1, 16>}, {transform_indices = @transform_5, window_bounds = array<i64: 1, 16, 256>}]} {
    %c0 = arith.constant 0 : index
    %c0_0 = arith.constant 0 : index
    %c0_1 = arith.constant 0 : index
    %0 = vector.load %arg1[%c0, %c0_0, %c0_1] : memref<1x16x256xf32, #tpu.memory_space<vmem>>, vector<1x16x256xf32>
    %cst = arith.constant dense<0.000000e+00> : vector<1x16xf32>
    %1 = vector.multi_reduction <add>, %0, %cst [2] : vector<1x16x256xf32> to vector<1x16xf32>
    %cst_2 = arith.constant 3.906250e-03 : f32
    %2 = vector.broadcast %cst_2 : f32 to vector<1x16xf32>
    %3 = arith.mulf %1, %2 : vector<1x16xf32>
    %c0_3 = arith.constant 0 : index
    %c0_4 = arith.constant 0 : index
    %4 = vector.load %arg2[%c0_3, %c0_4] : memref<16x8xf32, #tpu.memory_space<vmem>>, vector<16x8xf32>
    %cst_5 = arith.constant dense<0.000000e+00> : vector<1x8xf32>
    %5 = tpu.matmul %3, %4, %cst_5 {dimension_numbers = #tpu.dot_dimension_numbers<[1], [0], [0], [1], [0, 0, 1, 1], [], []>} : vector<1x16xf32>, vector<16x8xf32>, vector<1x8xf32> -> vector<1x8xf32>
    %c0_6 = arith.constant 0 : index
    %c0_7 = arith.constant 0 : index
    %6 = vector.load %arg3[%c0_6, %c0_7] : memref<1x8xf32, #tpu.memory_space<vmem>>, vector<1x8xf32>
    %7 = arith.addf %5, %6 : vector<1x8xf32>
    %cst_8 = arith.constant 0.000000e+00 : f32
    %8 = vector.broadcast %cst_8 : f32 to vector<1x8xf32>
    %9 = arith.maximumf %7, %8 : vector<1x8xf32>
    %c0_9 = arith.constant 0 : index
    %c0_10 = arith.constant 0 : index
    %10 = vector.load %arg4[%c0_9, %c0_10] : memref<8x16xf32, #tpu.memory_space<vmem>>, vector<8x16xf32>
    %cst_11 = arith.constant dense<0.000000e+00> : vector<1x16xf32>
    %11 = tpu.matmul %9, %10, %cst_11 {dimension_numbers = #tpu.dot_dimension_numbers<[1], [0], [0], [1], [0, 0, 1, 1], [], []>} : vector<1x8xf32>, vector<8x16xf32>, vector<1x16xf32> -> vector<1x16xf32>
    %c0_12 = arith.constant 0 : index
    %c0_13 = arith.constant 0 : index
    %12 = vector.load %arg5[%c0_12, %c0_13] : memref<1x16xf32, #tpu.memory_space<vmem>>, vector<1x16xf32>
    %13 = arith.addf %11, %12 : vector<1x16xf32>
    %14 = arith.negf %13 : vector<1x16xf32>
    %15 = math.exp %14 : vector<1x16xf32>
    %cst_14 = arith.constant 1.000000e+00 : f32
    %16 = vector.broadcast %cst_14 : f32 to vector<1x16xf32>
    %17 = arith.addf %16, %15 : vector<1x16xf32>
    %18 = arith.divf %16, %17 : vector<1x16xf32>
    %19 = vector.shape_cast %18 : vector<1x16xf32> to vector<1x16x1xf32>
    %20 = vector.broadcast %19 : vector<1x16x1xf32> to vector<1x16x256xf32>
    %21 = arith.mulf %0, %20 : vector<1x16x256xf32>
    %c0_15 = arith.constant 0 : index
    %c0_16 = arith.constant 0 : index
    %c0_17 = arith.constant 0 : index
    %22 = vector.load %arg6[%c0_15, %c0_16, %c0_17] : memref<1x16x256xf32, #tpu.memory_space<vmem>>, vector<1x16x256xf32>
    tpu.vector_store %arg6[%c0_15, %c0_16, %c0_17], %21 {strides = array<i32>} : memref<1x16x256xf32, #tpu.memory_space<vmem>>, vector<1x16x256xf32>,
    return
  }
  func.func @transform_0(%arg0: i32) -> (i32, i32, i32) {
    %c0_i32 = arith.constant 0 : i32
    %c0_i32_0 = arith.constant 0 : i32
    %c0_i32_1 = arith.constant 0 : i32
    return %arg0, %c0_i32, %c0_i32_0 : i32, i32, i32
  }
  func.func @transform_1(%arg0: i32) -> (i32, i32) {
    %c0_i32 = arith.constant 0 : i32
    %c0_i32_0 = arith.constant 0 : i32
    %c0_i32_1 = arith.constant 0 : i32
    return %c0_i32, %c0_i32_0 : i32, i32
  }
  func.func @transform_2(%arg0: i32) -> (i32, i32) {
    %c0_i32 = arith.constant 0 : i32
    %c0_i32_0 = arith.constant 0 : i32
    %c0_i32_1 = arith.constant 0 : i32
    return %c0_i32, %c0_i32_0 : i32, i32
  }
  func.func @transform_3(%arg0: i32) -> (i32, i32) {
    %c0_i32 = arith.constant 0 : i32
    %c0_i32_0 = arith.constant 0 : i32
    %c0_i32_1 = arith.constant 0 : i32
    return %c0_i32, %c0_i32_0 : i32, i32
  }
  func.func @transform_4(%arg0: i32) -> (i32, i32) {
    %c0_i32 = arith.constant 0 : i32
    %c0_i32_0 = arith.constant 0 : i32
    %c0_i32_1 = arith.constant 0 : i32
    return %c0_i32, %c0_i32_0 : i32, i32
  }
  func.func @transform_5(%arg0: i32) -> (i32, i32, i32) {
    %c0_i32 = arith.constant 0 : i32
    %c0_i32_0 = arith.constant 0 : i32
    %c0_i32_1 = arith.constant 0 : i32
    return %arg0, %c0_i32, %c0_i32_0 : i32, i32, i32
  }
}

</mosaic_0001>

<bundles_post_ra>
// kernel: tpu_custom_call.1
= control target key start
LH: loop header
LB: loop body
LE: loop exit
PB: predicated region body
PF: predicated region fallthrough
CT: control target
= control target key end

     0   :  { %10 = vsyncpa [#allocation3], 0  ;;  %s940_s0 = inlined_call_operand.hbm [shape: f32[2,16,256], index: 0, kind: input, shape index: {}]   ;;  %s941_s1 = inlined_call_operand.vmem [shape: f32[16,8], index: 1, kind: input, shape index: {}]   ;;  %s942_s2 = inlined_call_operand.vmem [shape: f32[1,8], index: 2, kind: input, shape index: {}]   ;;  %s943_s3 = inlined_call_operand.vmem [shape: f32[8,16], index: 3, kind: input, shape index: {}]   ;;  %s944_s4 = inlined_call_operand.vmem [shape: f32[1,16], index: 4, kind: input, shape index: {}]   ;;  %s945_s5 = inlined_call_operand.hbm [shape: f32[2,16,256], index: 5, kind: output, shape index: {}]  }
   0x1   :  { %12 = vsyncpa [#allocation3 + $0x1], 0 }
   0x2   :  { %13 = vsyncpa [#allocation4], 0 }
   0x3   :  { %15 = vsyncpa [#allocation4 + $0x1], 0  ;;  %s759_s18 = smov 0   ;;  %s761_s19 = smov 0  }
   0x4   :  { %s763_s20 = smov 0   ;;  %s765_s21 = smov 0  }
   0x5 LB: > { %s780_s22 = sadd.s32 4294967295, %s719_s21   ;;  %s535_s23 = sadd.s32 4294967294, %s719_s21   ;;  %s719_s21 = sphi %s765_s21, %s960_s21   ;;  %s715_s20 = sphi %s763_s20, %s959_s20   ;;  %s711_s19 = sphi %s761_s19, %s958_s19   ;;  %s707_s18 = sphi %s759_s18, %s957_s18  }
   0x6   : > { %s784_s24 = sadd.s32 1, %s719_s21   ;;  %s28_s25 = sadd.s32 1, %s715_s20 }
   0x7   : > { %s25_s26 = ssub.s32 %s719_s21, %s784_s24  ;;  %p35_p0 = scmp.ne.s32.totalorder %s715_s20, %s711_s19 }
   0x8   : > { %p26_p1 = scmp.eq.s32.totalorder %s25_s26, 0  ;;  %p36_p2 = scmp.eq.s32.totalorder %s719_s21, 0 }
   0x9   : > { %p41_p3 = scmp.ne.s32.totalorder %s711_s19, %s707_s18  ;;  %p42_p4 = scmp.eq.s32.totalorder %s780_s22, 0 }
   0xa   : > { %s796_s27 = scalar_select %p26_p1, %s715_s20, %s28_s25  }
   0xb   : > { %p798_p5 = por %p36_p2, %p35_p0  ;;  %p802_p6 = por %p42_p4, %p41_p3 }
   0xc   : > { %p149_p7 = scmp.eq.s32.totalorder %s780_s22, 1  ;;  %p155_p8 = scmp.eq.s32.totalorder %s535_s23, 1 }
   0xd   : > { %s949_s29 = scalar_select %p802_p6, 1, 0 }
   0xe   : > { %p583_p10 = scmp.lt.s32.totalorder %s719_s21, 2  ;;  %p809_p11 = por %p149_p7, %p35_p0 }
   0xf   : > { %p813_p12 = por %p155_p8, %p41_p3  ;;  %s187_s7 = sand.u32 1, %s715_s20  }
  0x10   : > { %s950_s30 = scalar_select %p809_p11, 1, 0 }
  0x11   : > { %s951_s6 = scalar_select %p813_p12, 1, 0 }
  0x12   : > { %s552_s8 = sshll.u32 %s719_s21, 9  ;;  %s538_s9 = sshll.u32 %s187_s7, 5 }
  0x13   : > { %s822_s12 = scalar_lea.hbm %s940_s0, %s552_s8  ;;  %s191_s13 = scalar_lea.vmem [#allocation2], %s538_s9 }
  0x14   : > { %s198_s14 = sshll.u32 %s191_s13, 4  ;;  %p826_p13 = pnand %p583_p10, %p798_p5  ;;  %s830_s14 = int_to_ptr.vmem [resolvable:$true] %s198_s14 }
  0x15   : > { %s832_s16 = scalar_lea.sflag [#allocation3], %s187_s7  ;;  %s627_s17 = scalar_lea.hbm %s822_s12, 512 }
  0x16   : > { %p628_p0 = scmp.ne.s32.totalorder %s822_s12, %s627_s17  ;;  %p629_p1 = pneg %p826_p13 }
  0x17   : > { %s632_s26 = scalar_lea.hbm %s940_s0, 1024  ;;  %p633_p4 = scmp.lt.s32.totalorder %s822_s12, %s940_s0 }
  0x18   : > { %p630_p2 = pnand %p629_p1, %p628_p0  ;;  %p634_p5 = scmp.lt.s32.totalorder %s632_s26, %s627_s17 }
  0x1a   : > { %p631_p3 = pneg %p630_p2  ;;  %p635_p7 = por %p634_p5, %p633_p4 }
  0x1c   : > { %p636_p8 = pnand %p635_p7, %p631_p3 }
  0x1e   : > { %639 = shalt.err (!%p636_p8)
}
  0x1f   : > { %s640_s7 = scalar_lea.vmem %s830_s14, 512  ;;  %s721_s9 = smov [#allocation2]  }
  0x20   : > { %p641_p10 = scmp.ne.s32.totalorder %s830_s14, %s640_s7  ;;  %s645_s10 = sshll.u32 %s721_s9, 4  ;;  %s646_s10 = int_to_ptr.vmem [resolvable:$false] %s645_s10 }
  0x21   : > { %s647_s11 = scalar_lea.vmem %s646_s10, 1024  ;;  %p648_p2 = scmp.lt.s32.totalorder %s830_s14, %s646_s10 }
  0x22   : > { %p643_p9 = pnand %p641_p10, %p629_p1  ;;  %p649_p12 = scmp.lt.s32.totalorder %s647_s11, %s640_s7 }
  0x24   : > { %p644_p0 = pneg %p643_p9  ;;  %p650_p11 = por %p649_p12, %p648_p2 }
  0x26   : > { %p651_p6 = pnand %p650_p11, %p644_p0 }
  0x28   : > { %654 = shalt.err (!%p651_p6)
}
  0x29   : > { %s722_s13 = smov 256   ;;  %s723_s17 = smov 16  }
  0x2a   : > { %578 = dma.hbm_to_vmem [thread:$0]  (!%p826_p13), %s822_s12, 512, %s830_s14, %s832_s16, %s722_s13, %s722_s13, %s723_s17  }
  0x2b   : > { %p541_p9 = scmp.ge.s32.totalorder %s719_s21, 1  ;;  %p206_p1 = scmp.lt.s32.totalorder %s719_s21, 3 }
  0x2d   : > { %p207_p3 = pnand %p541_p9, %p206_p1 }
  0x2e   : > { %s856_s23 = sand.u32 (!%p207_p3), 1, %s711_s19   ;;  %p953_p6 = scmp.ne.s32.totalorder (!%p207_p3), %s949_s29, 0 }
  0x2f   : > { %210 = sbr.rel (%p207_p3) target bundleno = 764 (0x2fc), region = 40  ;;  %s542_s25 = sshll.u32 (!%p207_p3), %s856_s23, 5 }
  0x30   : > { %s213_s26 = scalar_lea.sflag (!%p207_p3), [#allocation3], %s856_s23  ;;  %s216_s28 = scalar_lea.vmem (!%p207_p3), [#allocation2], %s542_s25 }
  0x34   : > { %698 = dma.done.wait (%p953_p6), %s213_s26, 512  }
  0x35   : > { %700 = vsyncadd (%p953_p6), %s213_s26, 4294966784  ;;  %v243_v0 = vld [vmem:[%s216_s28] sm:$0xff]  ;;  %v244_v1 = vld [vmem:[%s216_s28 + $0x8] sm:$0xff]  ;;  %v724_v6 = vmov 0.0   ;;  %vm725_vm0 = vmmov 0   ;;  %v260_v9 = vlaneseq  ;;  %vm271_vm1 = vcmask 130112  }
  0x36   : > { %v866_v2 = vld [vmem:[%s216_s28 + $0x10] sm:$0xff]  ;;  %v247_v3 = vadd.f32 %v244_v1, %v243_v0  ;;  %v868_v4 = vld [vmem:[%s216_s28 + $0x18] sm:$0xff]  ;;  %559 = vmatprep.subr.mxu0 %v724_v6  ;;  %v256_v7 = vld [vmem:[%s941_s1 + $0x8] sm:$0xff]  ;;  %566 = vmatprep.subr.mxu1 %v724_v6  ;;  %vm273_vm2 = vcmask 130048   ;;  %vm349_vm3 = vcmask 64512   ;;  %s242_s13 = scalar_lea.vmem [#allocation5], %s542_s25 }
  0x37   : > { %v250_v5 = vadd.f32 %v868_v4, %v866_v2  ;;  %560 = vmatpush3.msra.mxu0 %v256_v7  ;;  %v255_v8 = vld [vmem:[%s941_s1] sm:$0xff]  ;;  %563 = vmatprep.mubr.msk.f32.mxu0 %vm725_vm0, %v724_v6  ;;  %v261_v10 = vand.u32 127, %v260_v9  ;;  %v263_v11 = vshrl.u32 %v260_v9, 7  ;;  %s462_s17 = sshll.u32 %s242_s13, 4  ;;  %s553_s26 = sshll.u32 %s780_s22, 9  ;;  %s890_s17 = int_to_ptr.vmem [resolvable:$true] %s462_s17 }
  0x38   : > { %248 = vadd.xlane.f32.xlu0 %v247_v3  ;;  %561 = vmatprep.subr.mxu0 %v724_v6  ;;  %v347_v22 = vld [vmem:[%s943_s3] sm:$0xff]  ;;  %s895_s14 = scalar_lea.hbm %s945_s5, %s553_s26  ;;  %s449_s22 = scalar_lea.sflag [#allocation4], %s856_s23 }
  0x39   : > { %562 = vmatpush3.msra.mxu0 %v255_v8  ;;  %568 = vmatprep.mubr.msk.f32.mxu1 %vm725_vm0, %v724_v6  ;;  %v266_v12 = vadd.s32 4294967288, %v261_v10  ;;  %v264_v14 = vsub.s32 %v261_v10, %v263_v11  ;;  %v257_v23 = vld [vmem:[%s942_s2] sm:$0x1]  ;;  %v431_v35 = vsub.s32 0, %v263_v11  ;;  %s655_s25 = scalar_lea.vmem %s890_s17, 512  ;;  %p954_p12 = scmp.ne.s32.totalorder %s950_s30, 0 }
  0x3a   : > { %567 = vmatpush3.msra.mxu1 %v347_v22  ;;  %v348_v28 = vld [vmem:[%s944_s4] sm:$0x1]  ;;  %p656_p11 = scmp.ne.s32.totalorder %s890_s17, %s655_s25  ;;  %s726_s29 = smov [#allocation5]  }
  0x3b   : > { %v269_v16 = vsub.s32 %v266_v12, %v263_v11  ;;  %s659_s15 = sshll.u32 %s726_s29, 4  ;;  %s660_s15 = int_to_ptr.vmem [resolvable:$false] %s659_s15 }
  0x3c   : > { %251 = vadd.xlane.f32.xlu0 %v250_v5  ;;  %p657_p13 = pnand %p656_p11, %p954_p12  ;;  %s661_s16 = scalar_lea.vmem %s660_s15, 1024 }
  0x3d   : > { %p662_p5 = scmp.lt.s32.totalorder %s890_s17, %s660_s15  ;;  %p663_p7 = scmp.lt.s32.totalorder %s661_s16, %s655_s25 }
  0x3e   : > { %p658_p4 = pneg %p657_p13 }
  0x3f   : > { %p664_p8 = por %p663_p7, %p662_p5 }
  0x41   : > { %p665_p10 = pnand %p664_p8, %p658_p4 }
  0xc1   : > { %v249_v13 = vpop.xlane.xlu0 %248 }
  0xc2   : > { %v253_v15 = vmul.f32 0.00390625, %v249_v13 }
  0xc4   : > { %v265_v19 = vrot.slane %v253_v15, %v264_v14 }
  0xc5   : > { %v252_v17 = vpop.xlane.xlu0 %251 }
  0xc6   : > { %v254_v18 = vmul.f32 0.00390625, %v252_v17 }
  0xc8   : > { %v270_v20 = vrot.slane %v254_v18, %v269_v16 }
  0xca   : > { %v272_v21 = vsel %vm271_vm1, %v270_v20, %v265_v19 }
  0xcb   : > { %564 = vmatmul.mubr.msk.f32.vlgmr.msra.gmra.mxu0 %vm273_vm2, %v272_v21 }
 0x18b   : > { %v342_v24 = vpop.f32.mrf.mxu0 }
 0x18c   : > { %v343_v25 = vadd.f32 %v342_v24, %v257_v23 }
 0x18d   : > { %v565_v26 = vpop.f32.mrf.mxu0 }
 0x18e   : > { %v346_v27 = vmax.f32 %v343_v25, 0.0 }
 0x190   : > { %569 = vmatmul.mubr.msk.f32.vlgmr.msra.gmra.mxu1 %vm349_vm3, %v346_v27 }
 0x250   : > { %v419_v29 = vpop.f32.mrf.mxu1 }
 0x251   : > { %v420_v30 = vadd.f32 %v419_v29, %v348_v28 }
 0x252   : > { %v570_v31 = vpop.f32.mrf.mxu1 }
 0x253   : > { %v546_v32 = vmul.f32 -1.442695, %v420_v30 }
 0x255   : > { %623 = vpow2.f32 %v546_v32 }
 0x262   : > { %v624_v33 = vpop.eup %623 }
 0x263   : > { %v426_v34 = vadd.f32 1.0, %v624_v33 }
 0x265   : > { %625 = vrcp.f32 %v426_v34 }
 0x272   : > { %v626_v36 = vpop.eup %625 }
 0x273   : > { %v432_v37 = vrot.slane %v626_v36, %v431_v35 }
 0x275   : > { %434 = vbcast.lane.b32.xlu1 %v432_v37, 256 }
 0x279   : > { %438 = vbcast.lane.b32.xlu1 %v432_v37, 264 }
 0x2e7   : > { %v435_v38 = vpop.permute.xlu1 %434 }
 0x2e8   : > { %v440_v39 = vmul.f32 %v435_v38, %v243_v0  ;;  %v441_v40 = vmul.f32 %v435_v38, %v244_v1 }
 0x2ea   : > { %444 = vst [vmem:[%s242_s13] sm:$0xff] %v440_v39  ;;  %445 = vst [vmem:[%s242_s13 + $0x8] sm:$0xff] %v441_v40 }
 0x2eb   : > { %v439_v41 = vpop.permute.xlu1 %438 }
 0x2ec   : > { %v442_v42 = vmul.f32 %v439_v41, %v866_v2  ;;  %v443_v43 = vmul.f32 %v439_v41, %v868_v4 }
 0x2ee   : > { %446 = vst [vmem:[%s242_s13 + $0x10] sm:$0xff] %v442_v42  ;;  %447 = vst [vmem:[%s242_s13 + $0x18] sm:$0xff] %v443_v43 }
 0x2ef   : > { %668 = shalt.err (!%p665_p10)
}
 0x2f0   : > { %s669_s8 = scalar_lea.hbm %s895_s14, 512  ;;  %s673_s10 = scalar_lea.hbm %s945_s5, 1024 }
 0x2f1   : > { %p670_p0 = scmp.ne.s32.totalorder %s895_s14, %s669_s8  ;;  %p674_p1 = scmp.lt.s32.totalorder %s895_s14, %s945_s5 }
 0x2f2   : > { %p675_p3 = scmp.lt.s32.totalorder %s673_s10, %s669_s8 }
 0x2f3   : > { %p671_p2 = pnand %p670_p0, %p954_p12 }
 0x2f4   : > { %p676_p6 = por %p675_p3, %p674_p1 }
 0x2f5   : > { %p672_p9 = pneg %p671_p2 }
 0x2f7   : > { %p677_p11 = pnand %p676_p6, %p672_p9 }
 0x2f9   : > { %680 = shalt.err (!%p677_p11)
}
 0x2fa   : > { %s727_s26 = smov 256   ;;  %s728_s28 = smov 16  }
 0x2fb   : > { %573 = dma.vmem_to_hbm [thread:$0]  (%p954_p12), %s890_s17, 512, %s895_s14, %s449_s22, %s727_s26, %s727_s26, %s728_s28  }
 0x2fc PF: > { %s477_s12 = sand.u32 1, %s707_s18   ;;  %p955_p13 = scmp.ne.s32.totalorder %s951_s6, 0 }
 0x2fd   : > { %p956_p4 = scmp.ge.s32.totalorder %s719_s21, 2  ;;  %s478_s25 = scalar_lea.sflag [#allocation4], %s477_s12 }
 0x2ff   : > { %p580_p5 = pnand %p956_p4, %p955_p13 }
 0x301   : > { %p581_p7 = pneg %p580_p5 }
 0x303   : > { %702 = dma.done.wait (%p581_p7), %s478_s25, 512  }
 0x304   : > { %704 = vsyncadd (%p581_p7), %s478_s25, 4294966784  ;;  %p18_p8 = scmp.ge.s32.totalorder %s784_s24, 4   ;;  %s957_s18 = smov %s711_s19 }
 0x305   : > { %s958_s19 = smov %s715_s20  ;;  %s959_s20 = smov %s796_s27 }
 0x306   : > { %s960_s21 = smov %s784_s24  ;;  %20 = sbr.rel (!%p18_p8) target bundleno = 5 (0x5), region = 85 }
 0x30b   :  { %483 = vsyncpa [#allocation3], 1 }
 0x30c   :  { %485 = vsyncpa [#allocation3 + $0x1], 1 }
 0x30d   :  { %486 = vsyncpa [#allocation4], 1 }
 0x30e   :  { %488 = vsyncpa [#allocation4 + $0x1], 1 }

</bundles_post_ra>
